<compile_context>
chip_gen: v6e
topology: v6e:2x2x1
jax: 0.10.0
libtpu: 0.0.40
codegen_flags: <defaults>
</compile_context>

<pallas_src>
import jax
import jax.numpy as jnp
from jax.experimental import pallas as pl
from jax.experimental.pallas import tpu as pltpu


def _add_relu_conv1x1_kernel(a_ref, b_ref, w_ref, o_ref):
    # a_ref, b_ref: [1, Cin, m_tile] f32
    # w_ref:        [Cout, Cin]      bf16 (VMEM-resident across the grid)
    # o_ref:        [1, Cout, m_tile] f32
    x = jnp.maximum(a_ref[0] + b_ref[0], 0.0)            # fused add + relu, [Cin, m_tile]
    # out = W @ x ; bf16 weight is promoted, MXU accumulates in f32.
    o_ref[0] = jnp.dot(
        w_ref[...], x, preferred_element_type=jnp.float32
    ).astype(o_ref.dtype)


def _pick_m_tile(hw: int) -> int:
    """Lane-dense tile over the spatial axis when possible, else the full extent."""
    if hw >= 128 and hw % 128 == 0:
        for t in (512, 384, 256, 128):
            if hw % t == 0:
                return t
    return hw


def add_relu_conv1x1(x171, x179, weight):
    """x171, x179: [N, Cin, H, W] (NCHW, float32)
       weight:     [Cout, Cin, 1, 1] (PyTorch Conv2d layout)
       returns:    [N, Cout, H, W]
    """
    N, Cin, H, W = x171.shape
    Cout = weight.shape[0]
    HW = H * W

    # Pure reshapes (no data movement) — keep the NCHW-derived [Cin, M] layout.
    a = x171.reshape(N, Cin, HW)
    b = x179.reshape(N, Cin, HW)
    # [Cout, Cin, 1, 1] -> [Cout, Cin], bf16 for half the HBM traffic. Accumulation is f32.
    w = weight.reshape(Cout, Cin).astype(jnp.bfloat16)

    m_tile = _pick_m_tile(HW)
    grid = (N, HW // m_tile)

    cost = pl.CostEstimate(
        flops=2 * N * HW * Cin * Cout,
        transcendentals=0,
        bytes_accessed=(2 * N * Cin * HW + N * Cout * HW) * 4 + Cout * Cin * 2,
    )

    out = pl.pallas_call(
        _add_relu_conv1x1_kernel,
        out_shape=jax.ShapeDtypeStruct((N, Cout, HW), x171.dtype),
        grid_spec=pltpu.PrefetchScalarGridSpec(
            num_scalar_prefetch=0,
            grid=grid,
            in_specs=[
                pl.BlockSpec((1, Cin, m_tile), lambda n, m: (n, 0, m)),
                pl.BlockSpec((1, Cin, m_tile), lambda n, m: (n, 0, m)),
                # Same block every step -> weight stays resident in VMEM.
                pl.BlockSpec((Cout, Cin), lambda n, m: (0, 0)),
            ],
            out_specs=pl.BlockSpec((1, Cout, m_tile), lambda n, m: (n, 0, m)),
        ),
        compiler_params=pltpu.CompilerParams(
            dimension_semantics=("parallel", "parallel"),
        ),
        cost_estimate=cost,
    )(a, b, w)

    return out.reshape(N, Cout, H, W)


if __name__ == "__main__":
    key = jax.random.PRNGKey(0)
    k1, k2, k3 = jax.random.split(key, 3)

    N, C, H, W = 1, 400, 7, 7  # shapes implied by the module
    x171 = jax.random.normal(k1, (N, C, H, W), dtype=jnp.float32)
    x179 = jax.random.normal(k2, (N, C, H, W), dtype=jnp.float32)

    # Deterministic Conv2d(400, 400, 1, bias=False) weight, kaiming-uniform-ish.
    fan_in = C * 1 * 1
    bound = (1.0 / fan_in) ** 0.5
    weight = jax.random.uniform(
        k3, (C, C, 1, 1), minval=-bound, maxval=bound, dtype=jnp.float32
    )

    out = add_relu_conv1x1(x171, x179, weight)
    jax.block_until_ready(out)

    # Reference in plain JAX (same math: add -> relu -> 1x1 conv, f32 weight).
    ref = jnp.einsum(
        "nchw,oc->nohw",
        jnp.maximum(x171 + x179, 0.0),
        weight.reshape(C, C),
    )
    assert out.shape == (N, C, H, W)
    # bf16 weight quantization (perf-review recommendation) bounds drift vs the f32
    # reference to ~1e-3 on O(1) outputs; accumulation inside the kernel is f32.
    max_err = float(jnp.max(jnp.abs(out - ref)))
    assert jnp.allclose(out, ref, atol=1e-2, rtol=1e-2), max_err

    print("KERNEL_OK")
</pallas_src>

<mosaic_0001>
module attributes {stable_mosaic.version = 11 : i64} {
  func.func @_add_relu_conv1x1_kernel(%arg0: i32, %arg1: i32, %arg2: memref<1x400x49xf32, #tpu.memory_space<vmem>>, %arg3: memref<1x400x49xf32, #tpu.memory_space<vmem>>, %arg4: memref<400x400xbf16, #tpu.memory_space<vmem>>, %arg5: memref<1x400x49xf32, #tpu.memory_space<vmem>>) attributes {dimension_semantics = [#tpu.dimension_semantics<parallel>, #tpu.dimension_semantics<parallel>], iteration_bounds = array<i64: 1, 1>, scalar_prefetch = 0 : i64, scratch_operands = 0 : i64, tpu.core_type = #tpu.core_type<tc>, window_params = [{transform_indices = @transform_0, window_bounds = array<i64: 1, 400, 49>}, {transform_indices = @transform_1, window_bounds = array<i64: 1, 400, 49>}, {pipeline_mode = #tpu.pipeline_mode<synchronous>, transform_indices = @transform_2, window_bounds = array<i64: 400, 400>}, {transform_indices = @transform_3, window_bounds = array<i64: 1, 400, 49>}]} {
    %c0 = arith.constant 0 : index
    %c0_0 = arith.constant 0 : index
    %c0_1 = arith.constant 0 : index
    %0 = vector.load %arg2[%c0, %c0_0, %c0_1] : memref<1x400x49xf32, #tpu.memory_space<vmem>>, vector<1x400x49xf32>
    %1 = vector.shape_cast %0 : vector<1x400x49xf32> to vector<400x49xf32>
    %c0_2 = arith.constant 0 : index
    %c0_3 = arith.constant 0 : index
    %c0_4 = arith.constant 0 : index
    %2 = vector.load %arg3[%c0_2, %c0_3, %c0_4] : memref<1x400x49xf32, #tpu.memory_space<vmem>>, vector<1x400x49xf32>
    %3 = vector.shape_cast %2 : vector<1x400x49xf32> to vector<400x49xf32>
    %4 = arith.addf %1, %3 : vector<400x49xf32>
    %cst = arith.constant 0.000000e+00 : f32
    %5 = vector.broadcast %cst : f32 to vector<400x49xf32>
    %6 = arith.maximumf %4, %5 : vector<400x49xf32>
    %c0_5 = arith.constant 0 : index
    %c0_6 = arith.constant 0 : index
    %7 = vector.load %arg4[%c0_5, %c0_6] : memref<400x400xbf16, #tpu.memory_space<vmem>>, vector<400x400xbf16>
    %cst_7 = arith.constant dense<0.000000e+00> : vector<400x49xf32>
    %8 = tpu.matmul %7, %6, %cst_7 {dimension_numbers = #tpu.dot_dimension_numbers<[1], [0], [0], [1], [0, 0, 1, 1], [], []>} : vector<400x400xbf16>, vector<400x49xf32>, vector<400x49xf32> -> vector<400x49xf32>
    %c0_8 = arith.constant 0 : index
    %c0_9 = arith.constant 0 : index
    %c0_10 = arith.constant 0 : index
    %9 = vector.load %arg5[%c0_8, %c0_9, %c0_10] : memref<1x400x49xf32, #tpu.memory_space<vmem>>, vector<1x400x49xf32>
    %10 = vector.shape_cast %9 : vector<1x400x49xf32> to vector<400x49xf32>
    %11 = vector.shape_cast %8 : vector<400x49xf32> to vector<1x400x49xf32>
    tpu.vector_store %arg5[%c0_8, %c0_9, %c0_10], %11 {strides = array<i32>} : memref<1x400x49xf32, #tpu.memory_space<vmem>>, vector<1x400x49xf32>,
    return
  }
  func.func @transform_0(%arg0: i32, %arg1: i32) -> (i32, i32, i32) {
    %c0_i32 = arith.constant 0 : i32
    %c0_i32_0 = arith.constant 0 : i32
    return %arg0, %c0_i32, %arg1 : i32, i32, i32
  }
  func.func @transform_1(%arg0: i32, %arg1: i32) -> (i32, i32, i32) {
    %c0_i32 = arith.constant 0 : i32
    %c0_i32_0 = arith.constant 0 : i32
    return %arg0, %c0_i32, %arg1 : i32, i32, i32
  }
  func.func @transform_2(%arg0: i32, %arg1: i32) -> (i32, i32) {
    %c0_i32 = arith.constant 0 : i32
    %c0_i32_0 = arith.constant 0 : i32
    %c0_i32_1 = arith.constant 0 : i32
    return %c0_i32, %c0_i32_0 : i32, i32
  }
  func.func @transform_3(%arg0: i32, %arg1: i32) -> (i32, i32, i32) {
    %c0_i32 = arith.constant 0 : i32
    %c0_i32_0 = arith.constant 0 : i32
    return %arg0, %c0_i32, %arg1 : i32, i32, i32
  }
}

</mosaic_0001>

<bundles_post_ra>
// kernel: tpu_custom_call.1
= control target key start
LH: loop header
LB: loop body
LE: loop exit
PB: predicated region body
PF: predicated region fallthrough
CT: control target
= control target key end

     0   :  { %v1725_v0 = vmov 0.0   ;;  %vm789_vm0 = vcmask 130048   ;;  %vm1395_vm1 = vcmask 400384   ;;  %s2624_s0 = inlined_call_operand.vmem [shape: f32[1,400,49], index: 0, kind: input, shape index: {}]   ;;  %s2625_s1 = inlined_call_operand.vmem [shape: f32[1,400,49], index: 1, kind: input, shape index: {}]   ;;  %s2626_s2 = inlined_call_operand.vmem [shape: bf16[400,400], index: 2, kind: input, shape index: {}]   ;;  %s2627_s3 = inlined_call_operand.vmem [shape: f32[1,400,49], index: 3, kind: output, shape index: {}]  }
   0x1   :  { %865 = vmatprep.subr.mxu0 %v1725_v0  ;;  %v29_v1 = vld [vmem:[%s2624_s0 + $0x78] sm:$0xff]  ;;  %v28_v3 = vld [vmem:[%s2624_s0 + $0x70] sm:$0xff]  ;;  %1130 = vmatprep.subr.mxu1 %v1725_v0  ;;  %v27_v6 = vld [vmem:[%s2624_s0 + $0x68] sm:$0xff] }
   0x2   :  { %v79_v2 = vld [vmem:[%s2625_s1 + $0x78] sm:$0xff]  ;;  %v78_v5 = vld [vmem:[%s2625_s1 + $0x70] sm:$0xff]  ;;  %v77_v7 = vld [vmem:[%s2625_s1 + $0x68] sm:$0xff] }
   0x3   :  { %v129_v4 = vadd.f32 %v79_v2, %v29_v1  ;;  %v128_v8 = vadd.f32 %v78_v5, %v28_v3  ;;  %v127_v9 = vadd.f32 %v77_v7, %v27_v6  ;;  %v26_v10 = vld [vmem:[%s2624_s0 + $0x60] sm:$0xff]  ;;  %v25_v12 = vld [vmem:[%s2624_s0 + $0x58] sm:$0xff]  ;;  %v24_v17 = vld [vmem:[%s2624_s0 + $0x50] sm:$0xff] }
   0x4   :  { %v76_v11 = vld [vmem:[%s2625_s1 + $0x60] sm:$0xff]  ;;  %v75_v15 = vld [vmem:[%s2625_s1 + $0x58] sm:$0xff]  ;;  %v74_v18 = vld [vmem:[%s2625_s1 + $0x50] sm:$0xff] }
   0x5   :  { %v179_v13 = vmax.f32 %v129_v4, 0.0  ;;  %v126_v14 = vadd.f32 %v76_v11, %v26_v10  ;;  %v178_v16 = vmax.f32 %v128_v8, 0.0  ;;  %v177_v19 = vmax.f32 %v127_v9, 0.0  ;;  %v23_v21 = vld [vmem:[%s2624_s0 + $0x48] sm:$0xff]  ;;  %v22_v25 = vld [vmem:[%s2624_s0 + $0x40] sm:$0xff]  ;;  %v61_v27 = vld [vmem:[%s2624_s0 + $0x178] sm:$0xff] }
   0x6   :  { %v125_v20 = vadd.f32 %v75_v15, %v25_v12  ;;  %v73_v22 = vld [vmem:[%s2625_s1 + $0x48] sm:$0xff]  ;;  %v124_v24 = vadd.f32 %v74_v18, %v24_v17  ;;  %v72_v26 = vld [vmem:[%s2625_s1 + $0x40] sm:$0xff]  ;;  %v111_v28 = vld [vmem:[%s2625_s1 + $0x178] sm:$0xff] }
   0x7   :  { %866 = vmatpush1.msra.mxu0 %v179_v13  ;;  %v176_v23 = vmax.f32 %v126_v14, 0.0  ;;  %v123_v30 = vadd.f32 %v73_v22, %v23_v21  ;;  %v161_v31 = vadd.f32 %v111_v28, %v61_v27  ;;  %v60_v32 = vld [vmem:[%s2624_s0 + $0x170] sm:$0xff]  ;;  %v21_v34 = vld [vmem:[%s2624_s0 + $0x38] sm:$0xff]  ;;  %v59_v37 = vld [vmem:[%s2624_s0 + $0x168] sm:$0xff]  ;;  %v122_v39 = vadd.f32 %v72_v26, %v22_v25 }
   0x8   :  { %867 = vmatprep.subr.mxu0 %v1725_v0  ;;  %v175_v29 = vmax.f32 %v125_v20, 0.0  ;;  %v110_v33 = vld [vmem:[%s2625_s1 + $0x170] sm:$0xff]  ;;  %v71_v35 = vld [vmem:[%s2625_s1 + $0x38] sm:$0xff]  ;;  %v174_v38 = vmax.f32 %v124_v24, 0.0  ;;  %v109_v42 = vld [vmem:[%s2625_s1 + $0x168] sm:$0xff] }
   0x9   :  { %868 = vmatpush1.msra.mxu0 %v178_v16  ;;  %v160_v36 = vadd.f32 %v110_v33, %v60_v32  ;;  %v20_v40 = vld [vmem:[%s2624_s0 + $0x30] sm:$0xff]  ;;  %v211_v41 = vmax.f32 %v161_v31, 0.0  ;;  %v159_v45 = vadd.f32 %v109_v42, %v59_v37  ;;  %v58_v46 = vld [vmem:[%s2624_s0 + $0x160] sm:$0xff]  ;;  %v173_v48 = vmax.f32 %v123_v30, 0.0  ;;  %v57_v51 = vld [vmem:[%s2624_s0 + $0x158] sm:$0xff] }
   0xa   :  { %869 = vmatprep.subr.mxu0 %v1725_v0  ;;  %v70_v43 = vld [vmem:[%s2625_s1 + $0x30] sm:$0xff]  ;;  %v108_v47 = vld [vmem:[%s2625_s1 + $0x160] sm:$0xff]  ;;  %v121_v49 = vadd.f32 %v71_v35, %v21_v34  ;;  %v107_v52 = vld [vmem:[%s2625_s1 + $0x158] sm:$0xff]  ;;  %v172_v58 = vmax.f32 %v122_v39, 0.0 }
   0xb   :  { %870 = vmatpush1.msra.mxu0 %v177_v19  ;;  %v210_v44 = vmax.f32 %v160_v36, 0.0  ;;  %1131 = vmatpush1.msra.mxu1 %v211_v41  ;;  %v158_v50 = vadd.f32 %v108_v47, %v58_v46  ;;  %v19_v53 = vld [vmem:[%s2624_s0 + $0x28] sm:$0xff]  ;;  %v209_v55 = vmax.f32 %v159_v45, 0.0  ;;  %v157_v56 = vadd.f32 %v107_v52, %v57_v51  ;;  %v56_v57 = vld [vmem:[%s2624_s0 + $0x150] sm:$0xff]  ;;  %v18_v60 = vld [vmem:[%s2624_s0 + $0x20] sm:$0xff] }
   0xc   :  { %871 = vmatprep.subr.mxu0 %v1725_v0  ;;  %v69_v54 = vld [vmem:[%s2625_s1 + $0x28] sm:$0xff]  ;;  %1132 = vmatprep.subr.mxu1 %v1725_v0  ;;  %v120_v59 = vadd.f32 %v70_v43, %v20_v40  ;;  %v106_v62 = vld [vmem:[%s2625_s1 + $0x150] sm:$0xff]  ;;  %v68_v63 = vld [vmem:[%s2625_s1 + $0x20] sm:$0xff]  ;;  %v171_v4 = vmax.f32 %v121_v49, 0.0 }
   0xd   :  { %872 = vmatpush1.msra.mxu0 %v176_v23  ;;  %1133 = vmatpush1.msra.mxu1 %v210_v44  ;;  %v208_v61 = vmax.f32 %v158_v50, 0.0  ;;  %v156_v1 = vadd.f32 %v106_v62, %v56_v57  ;;  %v55_v2 = vld [vmem:[%s2624_s0 + $0x148] sm:$0xff]  ;;  %v119_v5 = vadd.f32 %v69_v54, %v19_v53  ;;  %v207_v6 = vmax.f32 %v157_v56, 0.0  ;;  %v54_v8 = vld [vmem:[%s2624_s0 + $0x140] sm:$0xff]  ;;  %v17_v10 = vld [vmem:[%s2624_s0 + $0x18] sm:$0xff] }
   0xe   :  { %873 = vmatprep.subr.mxu0 %v1725_v0  ;;  %1134 = vmatprep.subr.mxu1 %v1725_v0  ;;  %v105_v3 = vld [vmem:[%s2625_s1 + $0x148] sm:$0xff]  ;;  %v104_v9 = vld [vmem:[%s2625_s1 + $0x140] sm:$0xff]  ;;  %v67_v11 = vld [vmem:[%s2625_s1 + $0x18] sm:$0xff]  ;;  %v170_v13 = vmax.f32 %v120_v59, 0.0  ;;  %v118_v14 = vadd.f32 %v68_v63, %v18_v60 }
   0xf   :  { %874 = vmatpush1.msra.mxu0 %v175_v29  ;;  %1135 = vmatpush1.msra.mxu1 %v209_v55  ;;  %v155_v7 = vadd.f32 %v105_v3, %v55_v2  ;;  %v53_v12 = vld [vmem:[%s2624_s0 + $0x138] sm:$0xff]  ;;  %v16_v15 = vld [vmem:[%s2624_s0 + $0x10] sm:$0xff]  ;;  %v206_v16 = vmax.f32 %v156_v1, 0.0  ;;  %v154_v17 = vadd.f32 %v104_v9, %v54_v8  ;;  %v169_v22 = vmax.f32 %v119_v5, 0.0  ;;  %v15_v24 = vld [vmem:[%s2624_s0 + $0x8] sm:$0xff] }
  0x10   :  { %875 = vmatprep.subr.mxu0 %v1725_v0  ;;  %1136 = vmatprep.subr.mxu1 %v1725_v0  ;;  %v103_v18 = vld [vmem:[%s2625_s1 + $0x138] sm:$0xff]  ;;  %v66_v19 = vld [vmem:[%s2625_s1 + $0x10] sm:$0xff]  ;;  %v117_v23 = vadd.f32 %v67_v11, %v17_v10  ;;  %v65_v27 = vld [vmem:[%s2625_s1 + $0x8] sm:$0xff]  ;;  %v168_v30 = vmax.f32 %v118_v14, 0.0 }
  0x11   :  { %876 = vmatpush1.msra.mxu0 %v174_v38  ;;  %1137 = vmatpush1.msra.mxu1 %v208_v61  ;;  %v52_v20 = vld [vmem:[%s2624_s0 + $0x130] sm:$0xff]  ;;  %v205_v25 = vmax.f32 %v155_v7, 0.0  ;;  %v153_v26 = vadd.f32 %v103_v18, %v53_v12  ;;  %v51_v28 = vld [vmem:[%s2624_s0 + $0x128] sm:$0xff]  ;;  %v116_v31 = vadd.f32 %v66_v19, %v16_v15  ;;  %v14_v32 = vld [vmem:[%s2624_s0] sm:$0xff]  ;;  %v204_v33 = vmax.f32 %v154_v17, 0.0 }
  0x12   :  { %877 = vmatprep.subr.mxu0 %v1725_v0  ;;  %1138 = vmatprep.subr.mxu1 %v1725_v0  ;;  %v102_v21 = vld [vmem:[%s2625_s1 + $0x130] sm:$0xff]  ;;  %v101_v29 = vld [vmem:[%s2625_s1 + $0x128] sm:$0xff]  ;;  %v64_v35 = vld [vmem:[%s2625_s1] sm:$0xff]  ;;  %v167_v38 = vmax.f32 %v117_v23, 0.0  ;;  %v115_v39 = vadd.f32 %v65_v27, %v15_v24 }
  0x13   :  { %878 = vmatpush1.msra.mxu0 %v173_v48  ;;  %1139 = vmatpush1.msra.mxu1 %v207_v6  ;;  %v152_v34 = vadd.f32 %v102_v21, %v52_v20  ;;  %v50_v36 = vld [vmem:[%s2624_s0 + $0x120] sm:$0xff]  ;;  %v45_v40 = vld [vmem:[%s2624_s0 + $0xf8] sm:$0xff]  ;;  %v203_v41 = vmax.f32 %v153_v26, 0.0  ;;  %v151_v42 = vadd.f32 %v101_v29, %v51_v28  ;;  %v166_v46 = vmax.f32 %v116_v31, 0.0  ;;  %v44_v48 = vld [vmem:[%s2624_s0 + $0xf0] sm:$0xff] }
  0x14   :  { %879 = vmatprep.subr.mxu0 %v1725_v0  ;;  %1140 = vmatprep.subr.mxu1 %v1725_v0  ;;  %v100_v37 = vld [vmem:[%s2625_s1 + $0x120] sm:$0xff]  ;;  %v95_v43 = vld [vmem:[%s2625_s1 + $0xf8] sm:$0xff]  ;;  %v114_v47 = vadd.f32 %v64_v35, %v14_v32  ;;  %v94_v51 = vld [vmem:[%s2625_s1 + $0xf0] sm:$0xff]  ;;  %v165_v54 = vmax.f32 %v115_v39, 0.0 }
  0x15   :  { %880 = vmatpush1.msra.mxu0 %v172_v58  ;;  %1141 = vmatpush1.msra.mxu1 %v206_v16  ;;  %v49_v44 = vld [vmem:[%s2624_s0 + $0x118] sm:$0xff]  ;;  %v202_v49 = vmax.f32 %v152_v34, 0.0  ;;  %v150_v50 = vadd.f32 %v100_v37, %v50_v36  ;;  %v48_v52 = vld [vmem:[%s2624_s0 + $0x110] sm:$0xff]  ;;  %v145_v55 = vadd.f32 %v95_v43, %v45_v40  ;;  %v43_v56 = vld [vmem:[%s2624_s0 + $0xe8] sm:$0xff]  ;;  %v201_v57 = vmax.f32 %v151_v42, 0.0 }
  0x16   :  { %881 = vmatprep.subr.mxu0 %v1725_v0  ;;  %1142 = vmatprep.subr.mxu1 %v1725_v0  ;;  %v99_v45 = vld [vmem:[%s2625_s1 + $0x118] sm:$0xff]  ;;  %v98_v53 = vld [vmem:[%s2625_s1 + $0x110] sm:$0xff]  ;;  %v93_v59 = vld [vmem:[%s2625_s1 + $0xe8] sm:$0xff]  ;;  %v164_v62 = vmax.f32 %v114_v47, 0.0  ;;  %v144_v63 = vadd.f32 %v94_v51, %v44_v48 }
  0x17   :  { %882 = vmatpush1.msra.mxu0 %v171_v4  ;;  %1143 = vmatpush1.msra.mxu1 %v205_v25  ;;  %v149_v58 = vadd.f32 %v99_v45, %v49_v44  ;;  %v47_v60 = vld [vmem:[%s2624_s0 + $0x108] sm:$0xff]  ;;  %v42_v1 = vld [vmem:[%s2624_s0 + $0xe0] sm:$0xff]  ;;  %v200_v2 = vmax.f32 %v150_v50, 0.0  ;;  %v148_v3 = vadd.f32 %v98_v53, %v48_v52  ;;  %v195_v7 = vmax.f32 %v145_v55, 0.0  ;;  %v41_v9 = vld [vmem:[%s2624_s0 + $0xd8] sm:$0xff] }
  0x18   :  { %883 = vmatprep.subr.mxu0 %v1725_v0  ;;  %1144 = vmatprep.subr.mxu1 %v1725_v0  ;;  %v97_v61 = vld [vmem:[%s2625_s1 + $0x108] sm:$0xff]  ;;  %v92_v4 = vld [vmem:[%s2625_s1 + $0xe0] sm:$0xff]  ;;  %v143_v8 = vadd.f32 %v93_v59, %v43_v56  ;;  %v91_v10 = vld [vmem:[%s2625_s1 + $0xd8] sm:$0xff]  ;;  %v194_v17 = vmax.f32 %v144_v63, 0.0 }
  0x19   :  { %884 = vmatpush1.msra.mxu0 %v170_v13  ;;  %1145 = vmatpush1.msra.mxu1 %v204_v33  ;;  %v46_v5 = vld [vmem:[%s2624_s0 + $0x100] sm:$0xff]  ;;  %v199_v11 = vmax.f32 %v149_v58, 0.0  ;;  %v147_v12 = vadd.f32 %v97_v61, %v47_v60  ;;  %v40_v13 = vld [vmem:[%s2624_s0 + $0xd0] sm:$0xff]  ;;  %v63_v15 = vld [vmem:[%s2624_s0 + $0x188] sm:$0xff]  ;;  %v142_v18 = vadd.f32 %v92_v4, %v42_v1  ;;  %v198_v19 = vmax.f32 %v148_v3, 0.0 }
  0x1a   :  { %885 = vmatprep.subr.mxu0 %v1725_v0  ;;  %1146 = vmatprep.subr.mxu1 %v1725_v0  ;;  %v96_v6 = vld [vmem:[%s2625_s1 + $0x100] sm:$0xff]  ;;  %v90_v14 = vld [vmem:[%s2625_s1 + $0xd0] sm:$0xff]  ;;  %v113_v16 = vld [vmem:[%s2625_s1 + $0x188] sm:$0xff]  ;;  %v193_v23 = vmax.f32 %v143_v8, 0.0  ;;  %v141_v24 = vadd.f32 %v91_v10, %v41_v9 }
  0x1b   :  { %886 = vmatpush1.msra.mxu0 %v169_v22  ;;  %1147 = vmatpush1.msra.mxu1 %v203_v41  ;;  %v146_v20 = vadd.f32 %v96_v6, %v46_v5  ;;  %v62_v21 = vld [vmem:[%s2624_s0 + $0x180] sm:$0xff]  ;;  %v39_v25 = vld [vmem:[%s2624_s0 + $0xc8] sm:$0xff]  ;;  %v197_v26 = vmax.f32 %v147_v12, 0.0  ;;  %v163_v27 = vadd.f32 %v113_v16, %v63_v15  ;;  %v192_v29 = vmax.f32 %v142_v18, 0.0  ;;  %v37_v37 = vld [vmem:[%s2624_s0 + $0xb8] sm:$0xff] }
  0x1c   :  { %887 = vmatprep.subr.mxu0 %v1725_v0  ;;  %1148 = vmatprep.subr.mxu1 %v1725_v0  ;;  %v112_v22 = vld [vmem:[%s2625_s1 + $0x180] sm:$0xff]  ;;  %v89_v28 = vld [vmem:[%s2625_s1 + $0xc8] sm:$0xff]  ;;  %v191_v35 = vmax.f32 %v141_v24, 0.0  ;;  %v36_v40 = vld [vmem:[%s2624_s0 + $0xb0] sm:$0xff] }
  0x1d   :  { %888 = vmatpush1.msra.mxu0 %v168_v30  ;;  %1149 = vmatpush1.msra.mxu1 %v202_v49  ;;  %v140_v30 = vadd.f32 %v90_v14, %v40_v13  ;;  %v196_v31 = vmax.f32 %v146_v20, 0.0  ;;  %v162_v32 = vadd.f32 %v112_v22, %v62_v21  ;;  %v38_v33 = vld [vmem:[%s2624_s0 + $0xc0] sm:$0xff]  ;;  %v139_v36 = vadd.f32 %v89_v28, %v39_v25  ;;  %v86_v43 = vld [vmem:[%s2625_s1 + $0xb0] sm:$0xff]  ;;  %v35_v45 = vld [vmem:[%s2624_s0 + $0xa8] sm:$0xff] }
  0x1e   :  { %889 = vmatprep.subr.mxu0 %v1725_v0  ;;  %1150 = vmatprep.subr.mxu1 %v1725_v0  ;;  %v88_v34 = vld [vmem:[%s2625_s1 + $0xc0] sm:$0xff]  ;;  %v213_v39 = vmax.f32 %v163_v27, 0.0  ;;  %v85_v49 = vld [vmem:[%s2625_s1 + $0xa8] sm:$0xff]  ;;  %v136_v53 = vadd.f32 %v86_v43, %v36_v40  ;;  %v33_v59 = vld [vmem:[%s2624_s0 + $0x98] sm:$0xff] }
  0x1f   :  { %890 = vmatpush1.msra.mxu0 %v167_v38  ;;  %1151 = vmatpush1.msra.mxu1 %v201_v57  ;;  %v87_v38 = vld [vmem:[%s2625_s1 + $0xb8] sm:$0xff]  ;;  %v190_v41 = vmax.f32 %v140_v30, 0.0  ;;  %v138_v42 = vadd.f32 %v88_v34, %v38_v33  ;;  %v212_v44 = vmax.f32 %v162_v32, 0.0  ;;  %v189_v47 = vmax.f32 %v139_v36, 0.0  ;;  %v1581_v51 = vld [vmem:[%s2626_s2 + $0x4] ss:$16 sps:$4 sm:$0xff]  }
  0x20   :  { %891 = vmatprep.subr.mxu0 %v1725_v0  ;;  %1152 = vmatprep.subr.mxu1 %v1725_v0  ;;  %v137_v48 = vadd.f32 %v87_v38, %v37_v37  ;;  %v1576_v50 = vld [vmem:[%s2626_s2 + $0x8] ss:$16 sps:$4 sm:$0xff]   ;;  %v34_v55 = vld [vmem:[%s2624_s0 + $0xa0] sm:$0xff]  ;;  %v135_v58 = vadd.f32 %v85_v49, %v35_v45  ;;  %v186_v61 = vmax.f32 %v136_v53, 0.0  ;;  %v32_v63 = vld [vmem:[%s2624_s0 + $0x90] sm:$0xff] }
  0x21   :  { %892 = vmatpush1.msra.mxu0 %v166_v46  ;;  %1153 = vmatpush1.msra.mxu1 %v200_v2  ;;  %v1578_v46 = vld [vmem:[%s2626_s2 + $0xc] ss:$16 sps:$4 sm:$0xff]   ;;  %v188_v52 = vmax.f32 %v138_v42, 0.0  ;;  %v84_v56 = vld [vmem:[%s2625_s1 + $0xa0] sm:$0xff]  ;;  %v82_v1 = vld [vmem:[%s2625_s1 + $0x90] sm:$0xff] }
  0x22   :  { %893 = vmatprep.subr.mxu0 %v1725_v0  ;;  %1154 = vmatprep.subr.mxu1 %v1725_v0  ;;  %v187_v57 = vmax.f32 %v137_v48, 0.0  ;;  %v83_v60 = vld [vmem:[%s2625_s1 + $0x98] sm:$0xff]  ;;  %v31_v2 = vld [vmem:[%s2624_s0 + $0x88] sm:$0xff]  ;;  %v185_v3 = vmax.f32 %v135_v58, 0.0  ;;  %v132_v9 = vadd.f32 %v82_v1, %v32_v63  ;;  %v30_v10 = vld [vmem:[%s2624_s0 + $0x80] sm:$0xff] }
  0x23   :  { %894 = vmatpush1.msra.mxu0 %v165_v54  ;;  %1155 = vmatpush1.msra.mxu1 %v199_v11  ;;  %v1582_v54 = vld [vmem:[%s2626_s2 + $0x2c] ss:$16 sps:$4 sm:$0xff]   ;;  %v133_v4 = vadd.f32 %v83_v60, %v33_v59  ;;  %v1584_v6 = vld [vmem:[%s2626_s2 + $0x28] ss:$16 sps:$4 sm:$0xff]   ;;  %v80_v11 = vld [vmem:[%s2625_s1 + $0x80] sm:$0xff] }
  0x24   :  { %895 = vmatprep.subr.mxu0 %v1725_v0  ;;  %1156 = vmatprep.subr.mxu1 %v1725_v0  ;;  %v81_v5 = vld [vmem:[%s2625_s1 + $0x88] sm:$0xff]  ;;  %v182_v14 = vmax.f32 %v132_v9, 0.0  ;;  %v130_v15 = vadd.f32 %v80_v11, %v30_v10  ;;  %v1579_v20 = vld [vmem:[%s2626_s2] ss:$16 sps:$4 sm:$0xff]   ;;  %v1585_v21 = vld [vmem:[%s2626_s2 + $0x24] ss:$16 sps:$4 sm:$0xff]  }
  0x25   :  { %896 = vmatpush1.msra.mxu0 %v164_v62  ;;  %1157 = vmatpush1.msra.mxu1 %v198_v19  ;;  %v134_v62 = vadd.f32 %v84_v56, %v34_v55  ;;  %v183_v12 = vmax.f32 %v133_v4, 0.0  ;;  %v131_v13 = vadd.f32 %v81_v5, %v31_v2  ;;  %v1594_v18 = vld [vmem:[%s2626_s2 + $0x6c] ss:$16 sps:$4 sm:$0xff]   ;;  %v1596_v22 = vld [vmem:[%s2626_s2 + $0x68] ss:$16 sps:$4 sm:$0xff]  }
  0x26   :  { %897 = vmatprep.subr.mxu0 %v1725_v0  ;;  %1158 = vmatprep.subr.mxu1 %v1725_v0  ;;  %v180_v19 = vmax.f32 %v130_v15, 0.0  ;;  %v1587_v24 = vld [vmem:[%s2626_s2 + $0x20] ss:$16 sps:$4 sm:$0xff]   ;;  %v1602_v25 = vld [vmem:[%s2626_s2 + $0x88] ss:$16 sps:$4 sm:$0xff]  }
  0x27   :  { %898 = vmatpush2.msra.mxu0 %v195_v7  ;;  %1159 = vmatpush1.msra.mxu1 %v197_v26  ;;  %v1588_v7 = vld [vmem:[%s2626_s2 + $0x4c] ss:$16 sps:$4 sm:$0xff]   ;;  %v184_v8 = vmax.f32 %v134_v62, 0.0  ;;  %v181_v16 = vmax.f32 %v131_v13, 0.0  ;;  %v1593_v27 = vld [vmem:[%s2626_s2 + $0x40] ss:$16 sps:$4 sm:$0xff]  }
  0x28   :  { %899 = vmatprep.subr.mxu0 %v1725_v0  ;;  %1160 = vmatprep.subr.mxu1 %v1725_v0  ;;  %v1606_v26 = vld [vmem:[%s2626_s2 + $0xac] ss:$16 sps:$4 sm:$0xff]   ;;  %v1597_v28 = vld [vmem:[%s2626_s2 + $0x64] ss:$16 sps:$4 sm:$0xff]   ;;  %v1599_v30 = vld [vmem:[%s2626_s2 + $0x60] ss:$16 sps:$4 sm:$0xff]  }
  0x29   :  { %900 = vmatpush2.msra.mxu0 %v194_v17  ;;  %1161 = vmatpush1.msra.mxu1 %v196_v31  ;;  %v1590_v17 = vld [vmem:[%s2626_s2 + $0x48] ss:$16 sps:$4 sm:$0xff]   ;;  %v1612_v31 = vld [vmem:[%s2626_s2 + $0xcc] ss:$16 sps:$4 sm:$0xff]   ;;  %v1603_v32 = vld [vmem:[%s2626_s2 + $0x84] ss:$16 sps:$4 sm:$0xff]  }
  0x2a   :  { %901 = vmatprep.subr.mxu0 %v1725_v0  ;;  %1190 = vmatprep.subr.mxu1 %v1725_v0  ;;  %v1614_v33 = vld [vmem:[%s2626_s2 + $0xc8] ss:$16 sps:$4 sm:$0xff]   ;;  %v1618_v34 = vld [vmem:[%s2626_s2 + $0xec] ss:$16 sps:$4 sm:$0xff]   ;;  %v1609_v36 = vld [vmem:[%s2626_s2 + $0xa4] ss:$16 sps:$4 sm:$0xff]  }
  0x2b   :  { %902 = vmatpush2.msra.mxu0 %v193_v23  ;;  %1191 = vmatpush2.msra.mxu1 %v213_v39  ;;  %v1600_v23 = vld [vmem:[%s2626_s2 + $0x8c] ss:$16 sps:$4 sm:$0xff]   ;;  %v1620_v37 = vld [vmem:[%s2626_s2 + $0xe8] ss:$16 sps:$4 sm:$0xff]   ;;  %v1611_v39 = vld [vmem:[%s2626_s2 + $0xa0] ss:$16 sps:$4 sm:$0xff]  }
  0x2c   :  { %903 = vmatprep.subr.mxu0 %v1725_v0  ;;  %1192 = vmatprep.subr.mxu1 %v1725_v0  ;;  %v1624_v38 = vld [vmem:[%s2626_s2 + $0x10c] ss:$16 sps:$4 sm:$0xff]   ;;  %v1615_v40 = vld [vmem:[%s2626_s2 + $0xc4] ss:$16 sps:$4 sm:$0xff]   ;;  %v1617_v43 = vld [vmem:[%s2626_s2 + $0xc0] ss:$16 sps:$4 sm:$0xff]  }
  0x2d   :  { %904 = vmatpush2.msra.mxu0 %v192_v29  ;;  %1193 = vmatpush2.msra.mxu1 %v212_v44  ;;  %v1608_v29 = vld [vmem:[%s2626_s2 + $0xa8] ss:$16 sps:$4 sm:$0xff]   ;;  %v1630_v42 = vld [vmem:[%s2626_s2 + $0x12c] ss:$16 sps:$4 sm:$0xff]   ;;  %v1621_v44 = vld [vmem:[%s2626_s2 + $0xe4] ss:$16 sps:$4 sm:$0xff]  }
  0x2e   :  { %905 = vmatprep.subr.mxu0 %v1725_v0  ;;  %1550 = vmatprep.mubr.msk.bf16.mxu1 %vm789_vm0, %v1578_v46  ;;  %v1632_v45 = vld [vmem:[%s2626_s2 + $0x128] ss:$16 sps:$4 sm:$0xff]   ;;  %v1636_v46 = vld [vmem:[%s2626_s2 + $0x14c] ss:$16 sps:$4 sm:$0xff]   ;;  %v1627_v48 = vld [vmem:[%s2626_s2 + $0x104] ss:$16 sps:$4 sm:$0xff]  }
  0x2f   :  { %906 = vmatpush2.msra.mxu0 %v191_v35  ;;  %1195 = vmatmul.mubr.bf16.vlgmr.msra.gmra.mxu1 %v1576_v50  ;;  %v1605_v35 = vld [vmem:[%s2626_s2 + $0x80] ss:$16 sps:$4 sm:$0xff]   ;;  %v1638_v49 = vld [vmem:[%s2626_s2 + $0x148] ss:$16 sps:$4 sm:$0xff]   ;;  %v1642_v50 = vld [vmem:[%s2626_s2 + $0x16c] ss:$16 sps:$4 sm:$0xff]  }
  0x30   :  { %907 = vmatprep.subr.mxu0 %v1725_v0  ;;  %929 = vmatprep.mubr.bf16.mxu0 %v1581_v51  ;;  %v1629_v51 = vld [vmem:[%s2626_s2 + $0x100] ss:$16 sps:$4 sm:$0xff]   ;;  %v1644_v53 = vld [vmem:[%s2626_s2 + $0x168] ss:$16 sps:$4 sm:$0xff]   ;;  %v1639_v56 = vld [vmem:[%s2626_s2 + $0x144] ss:$16 sps:$4 sm:$0xff]  }
  0x31   :  { %908 = vmatpush2.msra.mxu0 %v190_v41  ;;  %1551 = vmatprep.mubr.msk.bf16.mxu1 %vm789_vm0, %v1582_v54  ;;  %v1626_v41 = vld [vmem:[%s2626_s2 + $0x108] ss:$16 sps:$4 sm:$0xff]   ;;  %v1648_v54 = vld [vmem:[%s2626_s2 + $0x18c] ss:$16 sps:$4 sm:$0xff]   ;;  %v1635_v55 = vld [vmem:[%s2626_s2 + $0x120] ss:$16 sps:$4 sm:$0xff]  }
  0x32   :  { %909 = vmatprep.subr.mxu0 %v1725_v0  ;;  %v1654_v58 = vld [vmem:[%s2626_s2 + $0x1ac] ss:$16 sps:$4 sm:$0xff]   ;;  %v1641_v59 = vld [vmem:[%s2626_s2 + $0x140] ss:$16 sps:$4 sm:$0xff]   ;;  %v1645_v60 = vld [vmem:[%s2626_s2 + $0x164] ss:$16 sps:$4 sm:$0xff]  }
  0x33   :  { %910 = vmatpush2.msra.mxu0 %v189_v47  ;;  %v1623_v47 = vld [vmem:[%s2626_s2 + $0xe0] ss:$16 sps:$4 sm:$0xff]   ;;  %v1660_v62 = vld [vmem:[%s2626_s2 + $0x1cc] ss:$16 sps:$4 sm:$0xff]   ;;  %v1651_v1 = vld [vmem:[%s2626_s2 + $0x184] ss:$16 sps:$4 sm:$0xff]  }
  0x34   :  { %911 = vmatprep.subr.mxu0 %v1725_v0  ;;  %v1647_v63 = vld [vmem:[%s2626_s2 + $0x160] ss:$16 sps:$4 sm:$0xff]   ;;  %v1662_v2 = vld [vmem:[%s2626_s2 + $0x1c8] ss:$16 sps:$4 sm:$0xff]   ;;  %v1657_v5 = vld [vmem:[%s2626_s2 + $0x1a4] ss:$16 sps:$4 sm:$0xff]  }
  0x35   :  { %912 = vmatpush2.msra.mxu0 %v188_v52  ;;  %v1633_v52 = vld [vmem:[%s2626_s2 + $0x124] ss:$16 sps:$4 sm:$0xff]   ;;  %v1653_v4 = vld [vmem:[%s2626_s2 + $0x180] ss:$16 sps:$4 sm:$0xff]   ;;  %v1674_v10 = vld [vmem:[%s2626_s2 + $0x208] ss:$16 sps:$4 sm:$0xff]  }
  0x36   :  { %913 = vmatprep.subr.mxu0 %v1725_v0  ;;  %v1663_v9 = vld [vmem:[%s2626_s2 + $0x1c4] ss:$16 sps:$4 sm:$0xff]   ;;  %v1678_v11 = vld [vmem:[%s2626_s2 + $0x22c] ss:$16 sps:$4 sm:$0xff]  }
  0x37   :  { %914 = vmatpush2.msra.mxu0 %v187_v57  ;;  %1203 = vmatmul.mubr.bf16.gmra.mxu1 %v1584_v6  ;;  %v1650_v57 = vld [vmem:[%s2626_s2 + $0x188] ss:$16 sps:$4 sm:$0xff]   ;;  %v1669_v13 = vld [vmem:[%s2626_s2 + $0x1e4] ss:$16 sps:$4 sm:$0xff]   ;;  %v1684_v15 = vld [vmem:[%s2626_s2 + $0x24c] ss:$16 sps:$4 sm:$0xff]  }
  0x38   :  { %915 = vmatprep.subr.mxu0 %v1725_v0  ;;  %1552 = vmatprep.mubr.msk.bf16.mxu1 %vm789_vm0, %v1588_v7  ;;  %v1668_v6 = vld [vmem:[%s2626_s2 + $0x1e8] ss:$16 sps:$4 sm:$0xff]   ;;  %v1672_v7 = vld [vmem:[%s2626_s2 + $0x20c] ss:$16 sps:$4 sm:$0xff]  }
  0x39   :  { %916 = vmatpush2.msra.mxu0 %v186_v61  ;;  %v1656_v61 = vld [vmem:[%s2626_s2 + $0x1a8] ss:$16 sps:$4 sm:$0xff]  }
  0x3a   :  { %917 = vmatprep.subr.mxu0 %v1725_v0 }
  0x3b   :  { %918 = vmatpush2.msra.mxu0 %v185_v3  ;;  %v1666_v3 = vld [vmem:[%s2626_s2 + $0x1ec] ss:$16 sps:$4 sm:$0xff]  }
  0x3c   :  { %919 = vmatprep.subr.mxu0 %v1725_v0 }
  0x3d   :  { %920 = vmatpush2.msra.mxu0 %v184_v8  ;;  %v1659_v8 = vld [vmem:[%s2626_s2 + $0x1a0] ss:$16 sps:$4 sm:$0xff]  }
  0x3e   :  { %921 = vmatprep.subr.mxu0 %v1725_v0 }
  0x3f   :  { %922 = vmatpush2.msra.mxu0 %v183_v12  ;;  %1211 = vmatmul.mubr.bf16.gmra.mxu1 %v1590_v17  ;;  %v1665_v12 = vld [vmem:[%s2626_s2 + $0x1c0] ss:$16 sps:$4 sm:$0xff]   ;;  %v1675_v17 = vld [vmem:[%s2626_s2 + $0x204] ss:$16 sps:$4 sm:$0xff]  }
  0x40   :  { %923 = vmatprep.subr.mxu0 %v1725_v0  ;;  %1553 = vmatprep.mubr.msk.bf16.mxu1 %vm789_vm0, %v1594_v18  ;;  %v1686_v18 = vld [vmem:[%s2626_s2 + $0x248] ss:$16 sps:$4 sm:$0xff]  }
  0x41   :  { %924 = vmatpush2.msra.mxu0 %v182_v14  ;;  %v1680_v14 = vld [vmem:[%s2626_s2 + $0x228] ss:$16 sps:$4 sm:$0xff]  }
  0x42   :  { %925 = vmatprep.subr.mxu0 %v1725_v0 }
  0x43   :  { %926 = vmatpush2.msra.mxu0 %v181_v16  ;;  %v1671_v16 = vld [vmem:[%s2626_s2 + $0x1e0] ss:$16 sps:$4 sm:$0xff]  }
  0x44   :  { %927 = vmatprep.subr.mxu0 %v1725_v0  ;;  %v1591_v0 = vld [vmem:[%s2626_s2 + $0x44] ss:$16 sps:$4 sm:$0xff]  }
  0x45   :  { %928 = vmatpush2.msra.mxu0 %v180_v19  ;;  %v1690_v19 = vld [vmem:[%s2626_s2 + $0x26c] ss:$16 sps:$4 sm:$0xff]  }
  0x46   :  { %930 = vmatmul.mubr.bf16.vlgmr.msra.gmra.mxu0 %v1579_v20  ;;  %v1677_v20 = vld [vmem:[%s2626_s2 + $0x200] ss:$16 sps:$4 sm:$0xff]  }
  0x47   :  { %937 = vmatprep.mubr.bf16.mxu0 %v1585_v21  ;;  %1219 = vmatmul.mubr.bf16.gmra.mxu1 %v1596_v22  ;;  %v1681_v21 = vld [vmem:[%s2626_s2 + $0x224] ss:$16 sps:$4 sm:$0xff]   ;;  %v1692_v22 = vld [vmem:[%s2626_s2 + $0x268] ss:$16 sps:$4 sm:$0xff]  }
  0x48   :  { %1554 = vmatprep.mubr.msk.bf16.mxu1 %vm789_vm0, %v1600_v23  ;;  %v1696_v23 = vld [vmem:[%s2626_s2 + $0x28c] ss:$16 sps:$4 sm:$0xff]  }
  0x4e   :  { %938 = vmatmul.mubr.bf16.gmra.mxu0 %v1587_v24  ;;  %v1683_v24 = vld [vmem:[%s2626_s2 + $0x220] ss:$16 sps:$4 sm:$0xff]  }
  0x4f   :  { %945 = vmatprep.mubr.bf16.mxu0 %v1591_v0  ;;  %1227 = vmatmul.mubr.bf16.gmra.mxu1 %v1602_v25  ;;  %v1687_v0 = vld [vmem:[%s2626_s2 + $0x244] ss:$16 sps:$4 sm:$0xff]   ;;  %v1698_v25 = vld [vmem:[%s2626_s2 + $0x288] ss:$16 sps:$4 sm:$0xff]  }
  0x50   :  { %1555 = vmatprep.mubr.msk.bf16.mxu1 %vm789_vm0, %v1606_v26  ;;  %v1702_v26 = vld [vmem:[%s2626_s2 + $0x2ac] ss:$16 sps:$4 sm:$0xff]  }
  0x56   :  { %946 = vmatmul.mubr.bf16.gmra.mxu0 %v1593_v27  ;;  %v1689_v27 = vld [vmem:[%s2626_s2 + $0x240] ss:$16 sps:$4 sm:$0xff]  }
  0x57   :  { %953 = vmatprep.mubr.bf16.mxu0 %v1597_v28  ;;  %1235 = vmatmul.mubr.bf16.gmra.mxu1 %v1608_v29  ;;  %v1693_v28 = vld [vmem:[%s2626_s2 + $0x264] ss:$16 sps:$4 sm:$0xff]   ;;  %v1704_v29 = vld [vmem:[%s2626_s2 + $0x2a8] ss:$16 sps:$4 sm:$0xff]  }
  0x58   :  { %1556 = vmatprep.mubr.msk.bf16.mxu1 %vm789_vm0, %v1612_v31  ;;  %v1695_v31 = vld [vmem:[%s2626_s2 + $0x260] ss:$16 sps:$4 sm:$0xff]  }
  0x5e   :  { %954 = vmatmul.mubr.bf16.gmra.mxu0 %v1599_v30  ;;  %v1708_v30 = vld [vmem:[%s2626_s2 + $0x2cc] ss:$16 sps:$4 sm:$0xff]  }
  0x5f   :  { %961 = vmatprep.mubr.bf16.mxu0 %v1603_v32  ;;  %1243 = vmatmul.mubr.bf16.gmra.mxu1 %v1614_v33  ;;  %v1699_v32 = vld [vmem:[%s2626_s2 + $0x284] ss:$16 sps:$4 sm:$0xff]   ;;  %v1710_v33 = vld [vmem:[%s2626_s2 + $0x2c8] ss:$16 sps:$4 sm:$0xff]  }
  0x60   :  { %1557 = vmatprep.mubr.msk.bf16.mxu1 %vm789_vm0, %v1618_v34  ;;  %v1714_v34 = vld [vmem:[%s2626_s2 + $0x2ec] ss:$16 sps:$4 sm:$0xff]  }
  0x66   :  { %962 = vmatmul.mubr.bf16.gmra.mxu0 %v1605_v35  ;;  %v1701_v35 = vld [vmem:[%s2626_s2 + $0x280] ss:$16 sps:$4 sm:$0xff]  }
  0x67   :  { %969 = vmatprep.mubr.bf16.mxu0 %v1609_v36  ;;  %1251 = vmatmul.mubr.bf16.gmra.mxu1 %v1620_v37  ;;  %v1705_v36 = vld [vmem:[%s2626_s2 + $0x2a4] ss:$16 sps:$4 sm:$0xff]   ;;  %v1716_v37 = vld [vmem:[%s2626_s2 + $0x2e8] ss:$16 sps:$4 sm:$0xff]  }
  0x68   :  { %1558 = vmatprep.mubr.msk.bf16.mxu1 %vm789_vm0, %v1624_v38  ;;  %v1720_v38 = vld [vmem:[%s2626_s2 + $0x30c] ss:$16 sps:$4 sm:$0xff]  }
  0x6e   :  { %970 = vmatmul.mubr.bf16.gmra.mxu0 %v1611_v39  ;;  %v1707_v39 = vld [vmem:[%s2626_s2 + $0x2a0] ss:$16 sps:$4 sm:$0xff]  }
  0x6f   :  { %977 = vmatprep.mubr.bf16.mxu0 %v1615_v40  ;;  %1259 = vmatmul.mubr.bf16.gmra.mxu1 %v1626_v41  ;;  %v1711_v40 = vld [vmem:[%s2626_s2 + $0x2c4] ss:$16 sps:$4 sm:$0xff]   ;;  %v1722_v41 = vld [vmem:[%s2626_s2 + $0x308] ss:$16 sps:$4 sm:$0xff]  }
  0x70   :  { %1559 = vmatprep.mubr.msk.bf16.mxu1 %vm789_vm0, %v1630_v42  ;;  %v1713_v42 = vld [vmem:[%s2626_s2 + $0x2c0] ss:$16 sps:$4 sm:$0xff]  }
  0x76   :  { %978 = vmatmul.mubr.bf16.gmra.mxu0 %v1617_v43  ;;  %v1717_v43 = vld [vmem:[%s2626_s2 + $0x2e4] ss:$16 sps:$4 sm:$0xff]  }
  0x77   :  { %985 = vmatprep.mubr.bf16.mxu0 %v1621_v44  ;;  %1267 = vmatmul.mubr.bf16.gmra.mxu1 %v1632_v45 }
  0x78   :  { %1560 = vmatprep.mubr.msk.bf16.mxu1 %vm789_vm0, %v1636_v46 }
  0x7e   :  { %986 = vmatmul.mubr.bf16.gmra.mxu0 %v1623_v47 }
  0x7f   :  { %993 = vmatprep.mubr.bf16.mxu0 %v1627_v48  ;;  %1275 = vmatmul.mubr.bf16.gmra.mxu1 %v1638_v49  ;;  %v1719_v48 = vld [vmem:[%s2626_s2 + $0x2e0] ss:$16 sps:$4 sm:$0xff]   ;;  %v1723_v49 = vld [vmem:[%s2626_s2 + $0x304] ss:$16 sps:$4 sm:$0xff]  }
  0x80   :  { %1561 = vmatprep.mubr.msk.bf16.mxu1 %vm789_vm0, %v1642_v50 }
  0x86   :  { %994 = vmatmul.mubr.bf16.gmra.mxu0 %v1629_v51 }
  0x87   :  { %1001 = vmatprep.mubr.bf16.mxu0 %v1633_v52  ;;  %1283 = vmatmul.mubr.bf16.gmra.mxu1 %v1644_v53  ;;  %v310_v52 = vld [vmem:[%s2626_s2 + $0x300] sm:$0xff]  ;;  %v312_v53 = vld [vmem:[%s2626_s2 + $0x310] sm:$0xff] }
  0x88   :  { %1562 = vmatprep.mubr.msk.bf16.mxu1 %vm789_vm0, %v1648_v54 }
  0x8e   :  { %1002 = vmatmul.mubr.bf16.gmra.mxu0 %v1635_v55 }
  0x8f   :  { %1009 = vmatprep.mubr.bf16.mxu0 %v1639_v56  ;;  %1291 = vmatmul.mubr.bf16.gmra.mxu1 %v1650_v57  ;;  %v1546_v56 = vcombine.low %v310_v52, %v312_v53 }
  0x90   :  { %1563 = vmatprep.mubr.msk.bf16.mxu1 %vm789_vm0, %v1654_v58 }
  0x96   :  { %1010 = vmatmul.mubr.bf16.gmra.mxu0 %v1641_v59 }
  0x97   :  { %1017 = vmatprep.mubr.bf16.mxu0 %v1645_v60  ;;  %1299 = vmatmul.mubr.bf16.gmra.mxu1 %v1656_v61 }
  0x98   :  { %1564 = vmatprep.mubr.msk.bf16.mxu1 %vm789_vm0, %v1660_v62 }
  0x9e   :  { %1018 = vmatmul.mubr.bf16.gmra.mxu0 %v1647_v63 }
  0x9f   :  { %1025 = vmatprep.mubr.bf16.mxu0 %v1651_v1  ;;  %1307 = vmatmul.mubr.bf16.gmra.mxu1 %v1662_v2 }
  0xa0   :  { %1565 = vmatprep.mubr.msk.bf16.mxu1 %vm789_vm0, %v1666_v3 }
  0xa6   :  { %1026 = vmatmul.mubr.bf16.gmra.mxu0 %v1653_v4 }
  0xa7   :  { %1033 = vmatprep.mubr.bf16.mxu0 %v1657_v5  ;;  %1315 = vmatmul.mubr.bf16.gmra.mxu1 %v1668_v6 }
  0xa8   :  { %1566 = vmatprep.mubr.msk.bf16.mxu1 %vm789_vm0, %v1672_v7 }
  0xae   :  { %1034 = vmatmul.mubr.bf16.gmra.mxu0 %v1659_v8 }
  0xaf   :  { %1041 = vmatprep.mubr.bf16.mxu0 %v1663_v9  ;;  %1323 = vmatmul.mubr.bf16.gmra.mxu1 %v1674_v10 }
  0xb0   :  { %1567 = vmatprep.mubr.msk.bf16.mxu1 %vm789_vm0, %v1678_v11 }
  0xb6   :  { %1042 = vmatmul.mubr.bf16.gmra.mxu0 %v1665_v12 }
  0xb7   :  { %1049 = vmatprep.mubr.bf16.mxu0 %v1669_v13  ;;  %1331 = vmatmul.mubr.bf16.gmra.mxu1 %v1680_v14 }
  0xb8   :  { %1568 = vmatprep.mubr.msk.bf16.mxu1 %vm789_vm0, %v1684_v15 }
  0xbe   :  { %1050 = vmatmul.mubr.bf16.gmra.mxu0 %v1671_v16 }
  0xbf   :  { %1057 = vmatprep.mubr.bf16.mxu0 %v1675_v17  ;;  %1339 = vmatmul.mubr.bf16.gmra.mxu1 %v1686_v18 }
  0xc0   :  { %1569 = vmatprep.mubr.msk.bf16.mxu1 %vm789_vm0, %v1690_v19 }
  0xc6   :  { %1058 = vmatmul.mubr.bf16.gmra.mxu0 %v1677_v20 }
  0xc7   :  { %1065 = vmatprep.mubr.bf16.mxu0 %v1681_v21  ;;  %1347 = vmatmul.mubr.bf16.gmra.mxu1 %v1692_v22 }
  0xc8   :  { %1570 = vmatprep.mubr.msk.bf16.mxu1 %vm789_vm0, %v1696_v23 }
  0xce   :  { %1066 = vmatmul.mubr.bf16.gmra.mxu0 %v1683_v24 }
  0xcf   :  { %1073 = vmatprep.mubr.bf16.mxu0 %v1687_v0  ;;  %1355 = vmatmul.mubr.bf16.gmra.mxu1 %v1698_v25 }
  0xd0   :  { %1571 = vmatprep.mubr.msk.bf16.mxu1 %vm789_vm0, %v1702_v26 }
  0xd6   :  { %1074 = vmatmul.mubr.bf16.gmra.mxu0 %v1689_v27 }
  0xd7   :  { %1081 = vmatprep.mubr.bf16.mxu0 %v1693_v28  ;;  %1363 = vmatmul.mubr.bf16.gmra.mxu1 %v1704_v29 }
  0xd8   :  { %1572 = vmatprep.mubr.msk.bf16.mxu1 %vm789_vm0, %v1708_v30 }
  0xde   :  { %1082 = vmatmul.mubr.bf16.gmra.mxu0 %v1695_v31 }
  0xdf   :  { %1089 = vmatprep.mubr.bf16.mxu0 %v1699_v32  ;;  %1371 = vmatmul.mubr.bf16.gmra.mxu1 %v1710_v33 }
  0xe0   :  { %1573 = vmatprep.mubr.msk.bf16.mxu1 %vm789_vm0, %v1714_v34 }
  0xe6   :  { %1090 = vmatmul.mubr.bf16.gmra.mxu0 %v1701_v35 }
  0xe7   :  { %1097 = vmatprep.mubr.bf16.mxu0 %v1705_v36  ;;  %1379 = vmatmul.mubr.bf16.gmra.mxu1 %v1716_v37 }
  0xe8   :  { %1574 = vmatprep.mubr.msk.bf16.mxu1 %vm789_vm0, %v1720_v38 }
  0xee   :  { %1098 = vmatmul.mubr.bf16.gmra.mxu0 %v1707_v39 }
  0xef   :  { %1105 = vmatprep.mubr.bf16.mxu0 %v1711_v40  ;;  %v1196_v44 = vpop.f32.mrf.mxu1  ;;  %1387 = vmatmul.mubr.bf16.gmra.mxu1 %v1722_v41 }
  0xf1   :  { %v1198_v45 = vpop.f32.mrf.mxu1 }
  0xf3   :  { %v1199_v46 = vpop.f32.mrf.mxu1 }
  0xf5   :  { %v1201_v47 = vpop.f32.mrf.mxu1 }
  0xf6   :  { %1106 = vmatmul.mubr.bf16.gmra.mxu0 %v1713_v42 }
  0xf7   :  { %1113 = vmatprep.mubr.bf16.mxu0 %v1717_v43  ;;  %v1204_v50 = vpop.f32.mrf.mxu1 }
  0xf9   :  { %v1206_v51 = vpop.f32.mrf.mxu1 }
  0xfb   :  { %v1207_v54 = vpop.f32.mrf.mxu1 }
  0xfd   :  { %v1209_v55 = vpop.f32.mrf.mxu1 }
  0xfe   :  { %1114 = vmatmul.mubr.bf16.gmra.mxu0 %v1719_v48 }
  0xff   :  { %1121 = vmatprep.mubr.bf16.mxu0 %v1723_v49  ;;  %v1212_v57 = vpop.f32.mrf.mxu1 }
 0x101   :  { %v1214_v58 = vpop.f32.mrf.mxu1 }
 0x103   :  { %v1215_v61 = vpop.f32.mrf.mxu1 }
 0x105   :  { %v1217_v63 = vpop.f32.mrf.mxu1 }
 0x106   :  { %v931_v59 = vpop.f32.mrf.mxu0  ;;  %1122 = vmatmul.mubr.bf16.gmra.mxu0 %v1546_v56 }
 0x107   :  { %v1197_v60 = vadd.f32 %v1196_v44, %v931_v59  ;;  %v1220_v3 = vpop.f32.mrf.mxu1 }
 0x108   :  { %v933_v62 = vpop.f32.mrf.mxu0 }
 0x109   :  { %1396 = vst.msk [vmem:[%s2627_s3] sm:$0xff] %vm1395_vm1, %v1197_v60  ;;  %v1222_v5 = vpop.f32.mrf.mxu1 }
 0x10a   :  { %v934_v1 = vpop.f32.mrf.mxu0 }
 0x10b   :  { %v1200_v2 = vadd.f32 %v1199_v46, %v934_v1  ;;  %v1223_v8 = vpop.f32.mrf.mxu1 }
 0x10c   :  { %v936_v4 = vpop.f32.mrf.mxu0 }
 0x10d   :  { %1397 = vst.msk [vmem:[%s2627_s3 + $0x8] sm:$0xff] %vm1395_vm1, %v1200_v2  ;;  %v1225_v10 = vpop.f32.mrf.mxu1 }
 0x10e   :  { %v939_v6 = vpop.f32.mrf.mxu0 }
 0x10f   :  { %v1205_v7 = vadd.f32 %v1204_v50, %v939_v6  ;;  %v1228_v13 = vpop.f32.mrf.mxu1 }
 0x110   :  { %v941_v9 = vpop.f32.mrf.mxu0 }
 0x111   :  { %1398 = vst.msk [vmem:[%s2627_s3 + $0x10] sm:$0xff] %vm1395_vm1, %v1205_v7  ;;  %v1230_v15 = vpop.f32.mrf.mxu1 }
 0x112   :  { %v942_v11 = vpop.f32.mrf.mxu0 }
 0x113   :  { %v1208_v12 = vadd.f32 %v1207_v54, %v942_v11  ;;  %v1231_v18 = vpop.f32.mrf.mxu1 }
 0x114   :  { %v944_v14 = vpop.f32.mrf.mxu0 }
 0x115   :  { %1399 = vst.msk [vmem:[%s2627_s3 + $0x18] sm:$0xff] %vm1395_vm1, %v1208_v12  ;;  %v1233_v20 = vpop.f32.mrf.mxu1 }
 0x116   :  { %v947_v16 = vpop.f32.mrf.mxu0 }
 0x117   :  { %v1213_v17 = vadd.f32 %v1212_v57, %v947_v16  ;;  %v1236_v23 = vpop.f32.mrf.mxu1 }
 0x118   :  { %v949_v19 = vpop.f32.mrf.mxu0 }
 0x119   :  { %1400 = vst.msk [vmem:[%s2627_s3 + $0x20] sm:$0xff] %vm1395_vm1, %v1213_v17  ;;  %v1238_v0 = vpop.f32.mrf.mxu1 }
 0x11a   :  { %v950_v21 = vpop.f32.mrf.mxu0 }
 0x11b   :  { %v1216_v22 = vadd.f32 %v1215_v61, %v950_v21  ;;  %v1239_v27 = vpop.f32.mrf.mxu1 }
 0x11c   :  { %v952_v24 = vpop.f32.mrf.mxu0 }
 0x11d   :  { %1401 = vst.msk [vmem:[%s2627_s3 + $0x28] sm:$0xff] %vm1395_vm1, %v1216_v22  ;;  %v1241_v29 = vpop.f32.mrf.mxu1 }
 0x11e   :  { %v955_v25 = vpop.f32.mrf.mxu0 }
 0x11f   :  { %v1221_v26 = vadd.f32 %v1220_v3, %v955_v25  ;;  %v1244_v32 = vpop.f32.mrf.mxu1 }
 0x120   :  { %v957_v28 = vpop.f32.mrf.mxu0 }
 0x121   :  { %1402 = vst.msk [vmem:[%s2627_s3 + $0x30] sm:$0xff] %vm1395_vm1, %v1221_v26  ;;  %v1246_v34 = vpop.f32.mrf.mxu1 }
 0x122   :  { %v958_v30 = vpop.f32.mrf.mxu0 }
 0x123   :  { %v1224_v31 = vadd.f32 %v1223_v8, %v958_v30  ;;  %v1247_v37 = vpop.f32.mrf.mxu1 }
 0x124   :  { %v960_v33 = vpop.f32.mrf.mxu0 }
 0x125   :  { %1403 = vst.msk [vmem:[%s2627_s3 + $0x38] sm:$0xff] %vm1395_vm1, %v1224_v31  ;;  %v1249_v39 = vpop.f32.mrf.mxu1 }
 0x126   :  { %v963_v35 = vpop.f32.mrf.mxu0 }
 0x127   :  { %v1229_v36 = vadd.f32 %v1228_v13, %v963_v35  ;;  %v1252_v42 = vpop.f32.mrf.mxu1 }
 0x128   :  { %v965_v38 = vpop.f32.mrf.mxu0 }
 0x129   :  { %1404 = vst.msk [vmem:[%s2627_s3 + $0x40] sm:$0xff] %vm1395_vm1, %v1229_v36  ;;  %v1254_v44 = vpop.f32.mrf.mxu1 }
 0x12a   :  { %v966_v40 = vpop.f32.mrf.mxu0 }
 0x12b   :  { %v1232_v41 = vadd.f32 %v1231_v18, %v966_v40  ;;  %v1255_v47 = vpop.f32.mrf.mxu1 }
 0x12c   :  { %v968_v43 = vpop.f32.mrf.mxu0 }
 0x12d   :  { %1405 = vst.msk [vmem:[%s2627_s3 + $0x48] sm:$0xff] %vm1395_vm1, %v1232_v41  ;;  %v1257_v49 = vpop.f32.mrf.mxu1 }
 0x12e   :  { %v971_v45 = vpop.f32.mrf.mxu0 }
 0x12f   :  { %v1237_v46 = vadd.f32 %v1236_v23, %v971_v45  ;;  %v1260_v52 = vpop.f32.mrf.mxu1 }
 0x130   :  { %v973_v48 = vpop.f32.mrf.mxu0 }
 0x131   :  { %1406 = vst.msk [vmem:[%s2627_s3 + $0x50] sm:$0xff] %vm1395_vm1, %v1237_v46  ;;  %v1262_v54 = vpop.f32.mrf.mxu1 }
 0x132   :  { %v974_v50 = vpop.f32.mrf.mxu0 }
 0x133   :  { %v1240_v51 = vadd.f32 %v1239_v27, %v974_v50  ;;  %v1263_v57 = vpop.f32.mrf.mxu1 }
 0x134   :  { %v976_v53 = vpop.f32.mrf.mxu0 }
 0x135   :  { %1407 = vst.msk [vmem:[%s2627_s3 + $0x58] sm:$0xff] %vm1395_vm1, %v1240_v51  ;;  %v1265_v59 = vpop.f32.mrf.mxu1 }
 0x136   :  { %v979_v55 = vpop.f32.mrf.mxu0 }
 0x137   :  { %v1245_v56 = vadd.f32 %v1244_v32, %v979_v55  ;;  %v1268_v62 = vpop.f32.mrf.mxu1 }
 0x138   :  { %v981_v58 = vpop.f32.mrf.mxu0 }
 0x139   :  { %1408 = vst.msk [vmem:[%s2627_s3 + $0x60] sm:$0xff] %vm1395_vm1, %v1245_v56  ;;  %v1270_v1 = vpop.f32.mrf.mxu1 }
 0x13a   :  { %v982_v60 = vpop.f32.mrf.mxu0 }
 0x13b   :  { %v1248_v61 = vadd.f32 %v1247_v37, %v982_v60  ;;  %v1271_v4 = vpop.f32.mrf.mxu1 }
 0x13c   :  { %v984_v63 = vpop.f32.mrf.mxu0 }
 0x13d   :  { %1409 = vst.msk [vmem:[%s2627_s3 + $0x68] sm:$0xff] %vm1395_vm1, %v1248_v61  ;;  %v1273_v6 = vpop.f32.mrf.mxu1 }
 0x13e   :  { %v987_v2 = vpop.f32.mrf.mxu0 }
 0x13f   :  { %v1253_v3 = vadd.f32 %v1252_v42, %v987_v2  ;;  %v1276_v9 = vpop.f32.mrf.mxu1 }
 0x140   :  { %v989_v5 = vpop.f32.mrf.mxu0 }
 0x141   :  { %1410 = vst.msk [vmem:[%s2627_s3 + $0x70] sm:$0xff] %vm1395_vm1, %v1253_v3  ;;  %v1278_v11 = vpop.f32.mrf.mxu1 }
 0x142   :  { %v990_v7 = vpop.f32.mrf.mxu0 }
 0x143   :  { %v1256_v8 = vadd.f32 %v1255_v47, %v990_v7  ;;  %v1279_v14 = vpop.f32.mrf.mxu1 }
 0x144   :  { %v992_v10 = vpop.f32.mrf.mxu0 }
 0x145   :  { %1411 = vst.msk [vmem:[%s2627_s3 + $0x78] sm:$0xff] %vm1395_vm1, %v1256_v8  ;;  %v1281_v16 = vpop.f32.mrf.mxu1 }
 0x146   :  { %v995_v12 = vpop.f32.mrf.mxu0 }
 0x147   :  { %v1261_v13 = vadd.f32 %v1260_v52, %v995_v12  ;;  %v1284_v19 = vpop.f32.mrf.mxu1 }
 0x148   :  { %v997_v15 = vpop.f32.mrf.mxu0 }
 0x149   :  { %1412 = vst.msk [vmem:[%s2627_s3 + $0x80] sm:$0xff] %vm1395_vm1, %v1261_v13  ;;  %v1286_v21 = vpop.f32.mrf.mxu1 }
 0x14a   :  { %v998_v17 = vpop.f32.mrf.mxu0 }
 0x14b   :  { %v1264_v18 = vadd.f32 %v1263_v57, %v998_v17  ;;  %v1287_v24 = vpop.f32.mrf.mxu1 }
 0x14c   :  { %v1000_v20 = vpop.f32.mrf.mxu0 }
 0x14d   :  { %1413 = vst.msk [vmem:[%s2627_s3 + $0x88] sm:$0xff] %vm1395_vm1, %v1264_v18  ;;  %v1289_v25 = vpop.f32.mrf.mxu1 }
 0x14e   :  { %v1003_v22 = vpop.f32.mrf.mxu0 }
 0x14f   :  { %v1269_v23 = vadd.f32 %v1268_v62, %v1003_v22  ;;  %v1292_v28 = vpop.f32.mrf.mxu1 }
 0x150   :  { %v1005_v0 = vpop.f32.mrf.mxu0 }
 0x151   :  { %1414 = vst.msk [vmem:[%s2627_s3 + $0x90] sm:$0xff] %vm1395_vm1, %v1269_v23  ;;  %v1294_v30 = vpop.f32.mrf.mxu1 }
 0x152   :  { %v1006_v26 = vpop.f32.mrf.mxu0 }
 0x153   :  { %v1272_v27 = vadd.f32 %v1271_v4, %v1006_v26  ;;  %v1295_v33 = vpop.f32.mrf.mxu1 }
 0x154   :  { %v1008_v29 = vpop.f32.mrf.mxu0 }
 0x155   :  { %1415 = vst.msk [vmem:[%s2627_s3 + $0x98] sm:$0xff] %vm1395_vm1, %v1272_v27  ;;  %v1297_v35 = vpop.f32.mrf.mxu1 }
 0x156   :  { %v1011_v31 = vpop.f32.mrf.mxu0 }
 0x157   :  { %v1277_v32 = vadd.f32 %v1276_v9, %v1011_v31  ;;  %v1300_v38 = vpop.f32.mrf.mxu1 }
 0x158   :  { %v1013_v34 = vpop.f32.mrf.mxu0 }
 0x159   :  { %1416 = vst.msk [vmem:[%s2627_s3 + $0xa0] sm:$0xff] %vm1395_vm1, %v1277_v32  ;;  %v1302_v40 = vpop.f32.mrf.mxu1 }
 0x15a   :  { %v1014_v36 = vpop.f32.mrf.mxu0 }
 0x15b   :  { %v1280_v37 = vadd.f32 %v1279_v14, %v1014_v36  ;;  %v1303_v43 = vpop.f32.mrf.mxu1 }
 0x15c   :  { %v1016_v39 = vpop.f32.mrf.mxu0 }
 0x15d   :  { %1417 = vst.msk [vmem:[%s2627_s3 + $0xa8] sm:$0xff] %vm1395_vm1, %v1280_v37  ;;  %v1305_v45 = vpop.f32.mrf.mxu1 }
 0x15e   :  { %v1019_v41 = vpop.f32.mrf.mxu0 }
 0x15f   :  { %v1285_v42 = vadd.f32 %v1284_v19, %v1019_v41  ;;  %v1308_v48 = vpop.f32.mrf.mxu1 }
 0x160   :  { %v1021_v44 = vpop.f32.mrf.mxu0 }
 0x161   :  { %1418 = vst.msk [vmem:[%s2627_s3 + $0xb0] sm:$0xff] %vm1395_vm1, %v1285_v42  ;;  %v1310_v50 = vpop.f32.mrf.mxu1 }
 0x162   :  { %v1022_v46 = vpop.f32.mrf.mxu0 }
 0x163   :  { %v1288_v47 = vadd.f32 %v1287_v24, %v1022_v46  ;;  %v1311_v53 = vpop.f32.mrf.mxu1 }
 0x164   :  { %v1024_v49 = vpop.f32.mrf.mxu0 }
 0x165   :  { %1419 = vst.msk [vmem:[%s2627_s3 + $0xb8] sm:$0xff] %vm1395_vm1, %v1288_v47  ;;  %v1313_v55 = vpop.f32.mrf.mxu1 }
 0x166   :  { %v1027_v51 = vpop.f32.mrf.mxu0 }
 0x167   :  { %v1293_v52 = vadd.f32 %v1292_v28, %v1027_v51  ;;  %v1316_v58 = vpop.f32.mrf.mxu1 }
 0x168   :  { %v1029_v54 = vpop.f32.mrf.mxu0 }
 0x169   :  { %1420 = vst.msk [vmem:[%s2627_s3 + $0xc0] sm:$0xff] %vm1395_vm1, %v1293_v52  ;;  %v1318_v60 = vpop.f32.mrf.mxu1 }
 0x16a   :  { %v1030_v56 = vpop.f32.mrf.mxu0 }
 0x16b   :  { %v1296_v57 = vadd.f32 %v1295_v33, %v1030_v56  ;;  %v1319_v63 = vpop.f32.mrf.mxu1 }
 0x16c   :  { %v1032_v59 = vpop.f32.mrf.mxu0 }
 0x16d   :  { %1421 = vst.msk [vmem:[%s2627_s3 + $0xc8] sm:$0xff] %vm1395_vm1, %v1296_v57  ;;  %v1321_v2 = vpop.f32.mrf.mxu1 }
 0x16e   :  { %v1035_v61 = vpop.f32.mrf.mxu0 }
 0x16f   :  { %v1301_v62 = vadd.f32 %v1300_v38, %v1035_v61  ;;  %v1324_v5 = vpop.f32.mrf.mxu1 }
 0x170   :  { %v1037_v1 = vpop.f32.mrf.mxu0 }
 0x171   :  { %1422 = vst.msk [vmem:[%s2627_s3 + $0xd0] sm:$0xff] %vm1395_vm1, %v1301_v62  ;;  %v1326_v7 = vpop.f32.mrf.mxu1 }
 0x172   :  { %v1038_v3 = vpop.f32.mrf.mxu0 }
 0x173   :  { %v1304_v4 = vadd.f32 %v1303_v43, %v1038_v3  ;;  %v1327_v10 = vpop.f32.mrf.mxu1 }
 0x174   :  { %v1040_v6 = vpop.f32.mrf.mxu0 }
 0x175   :  { %1423 = vst.msk [vmem:[%s2627_s3 + $0xd8] sm:$0xff] %vm1395_vm1, %v1304_v4  ;;  %v1329_v12 = vpop.f32.mrf.mxu1 }
 0x176   :  { %v1043_v8 = vpop.f32.mrf.mxu0 }
 0x177   :  { %v1309_v9 = vadd.f32 %v1308_v48, %v1043_v8  ;;  %v1332_v15 = vpop.f32.mrf.mxu1 }
 0x178   :  { %v1045_v11 = vpop.f32.mrf.mxu0 }
 0x179   :  { %1424 = vst.msk [vmem:[%s2627_s3 + $0xe0] sm:$0xff] %vm1395_vm1, %v1309_v9  ;;  %v1334_v17 = vpop.f32.mrf.mxu1 }
 0x17a   :  { %v1046_v13 = vpop.f32.mrf.mxu0 }
 0x17b   :  { %v1312_v14 = vadd.f32 %v1311_v53, %v1046_v13  ;;  %v1335_v20 = vpop.f32.mrf.mxu1 }
 0x17c   :  { %v1048_v16 = vpop.f32.mrf.mxu0 }
 0x17d   :  { %1425 = vst.msk [vmem:[%s2627_s3 + $0xe8] sm:$0xff] %vm1395_vm1, %v1312_v14  ;;  %v1337_v22 = vpop.f32.mrf.mxu1 }
 0x17e   :  { %v1051_v18 = vpop.f32.mrf.mxu0 }
 0x17f   :  { %v1317_v19 = vadd.f32 %v1316_v58, %v1051_v18  ;;  %v1340_v0 = vpop.f32.mrf.mxu1 }
 0x180   :  { %v1053_v21 = vpop.f32.mrf.mxu0 }
 0x181   :  { %1426 = vst.msk [vmem:[%s2627_s3 + $0xf0] sm:$0xff] %vm1395_vm1, %v1317_v19  ;;  %v1342_v26 = vpop.f32.mrf.mxu1 }
 0x182   :  { %v1054_v23 = vpop.f32.mrf.mxu0 }
 0x183   :  { %v1320_v24 = vadd.f32 %v1319_v63, %v1054_v23  ;;  %v1343_v29 = vpop.f32.mrf.mxu1 }
 0x184   :  { %v1056_v25 = vpop.f32.mrf.mxu0 }
 0x185   :  { %1427 = vst.msk [vmem:[%s2627_s3 + $0xf8] sm:$0xff] %vm1395_vm1, %v1320_v24  ;;  %v1345_v31 = vpop.f32.mrf.mxu1 }
 0x186   :  { %v1059_v27 = vpop.f32.mrf.mxu0 }
 0x187   :  { %v1325_v28 = vadd.f32 %v1324_v5, %v1059_v27  ;;  %v1348_v34 = vpop.f32.mrf.mxu1 }
 0x188   :  { %v1061_v30 = vpop.f32.mrf.mxu0 }
 0x189   :  { %1428 = vst.msk [vmem:[%s2627_s3 + $0x100] sm:$0xff] %vm1395_vm1, %v1325_v28  ;;  %v1350_v36 = vpop.f32.mrf.mxu1 }
 0x18a   :  { %v1062_v32 = vpop.f32.mrf.mxu0 }
 0x18b   :  { %v1328_v33 = vadd.f32 %v1327_v10, %v1062_v32  ;;  %v1351_v39 = vpop.f32.mrf.mxu1 }
 0x18c   :  { %v1064_v35 = vpop.f32.mrf.mxu0 }
 0x18d   :  { %1429 = vst.msk [vmem:[%s2627_s3 + $0x108] sm:$0xff] %vm1395_vm1, %v1328_v33  ;;  %v1353_v41 = vpop.f32.mrf.mxu1 }
 0x18e   :  { %v1067_v37 = vpop.f32.mrf.mxu0 }
 0x18f   :  { %v1333_v38 = vadd.f32 %v1332_v15, %v1067_v37  ;;  %v1356_v44 = vpop.f32.mrf.mxu1 }
 0x190   :  { %v1069_v40 = vpop.f32.mrf.mxu0 }
 0x191   :  { %1430 = vst.msk [vmem:[%s2627_s3 + $0x110] sm:$0xff] %vm1395_vm1, %v1333_v38  ;;  %v1358_v46 = vpop.f32.mrf.mxu1 }
 0x192   :  { %v1070_v42 = vpop.f32.mrf.mxu0 }
 0x193   :  { %v1336_v43 = vadd.f32 %v1335_v20, %v1070_v42  ;;  %v1359_v49 = vpop.f32.mrf.mxu1 }
 0x194   :  { %v1072_v45 = vpop.f32.mrf.mxu0 }
 0x195   :  { %1431 = vst.msk [vmem:[%s2627_s3 + $0x118] sm:$0xff] %vm1395_vm1, %v1336_v43  ;;  %v1361_v51 = vpop.f32.mrf.mxu1 }
 0x196   :  { %v1075_v47 = vpop.f32.mrf.mxu0 }
 0x197   :  { %v1341_v48 = vadd.f32 %v1340_v0, %v1075_v47  ;;  %v1364_v54 = vpop.f32.mrf.mxu1 }
 0x198   :  { %v1077_v50 = vpop.f32.mrf.mxu0 }
 0x199   :  { %1432 = vst.msk [vmem:[%s2627_s3 + $0x120] sm:$0xff] %vm1395_vm1, %v1341_v48  ;;  %v1366_v56 = vpop.f32.mrf.mxu1 }
 0x19a   :  { %v1078_v52 = vpop.f32.mrf.mxu0 }
 0x19b   :  { %v1344_v53 = vadd.f32 %v1343_v29, %v1078_v52  ;;  %v1367_v59 = vpop.f32.mrf.mxu1 }
 0x19c   :  { %v1080_v55 = vpop.f32.mrf.mxu0 }
 0x19d   :  { %1433 = vst.msk [vmem:[%s2627_s3 + $0x128] sm:$0xff] %vm1395_vm1, %v1344_v53  ;;  %v1369_v61 = vpop.f32.mrf.mxu1 }
 0x19e   :  { %v1083_v57 = vpop.f32.mrf.mxu0 }
 0x19f   :  { %v1349_v58 = vadd.f32 %v1348_v34, %v1083_v57  ;;  %v1372_v1 = vpop.f32.mrf.mxu1 }
 0x1a0   :  { %v1085_v60 = vpop.f32.mrf.mxu0 }
 0x1a1   :  { %1434 = vst.msk [vmem:[%s2627_s3 + $0x130] sm:$0xff] %vm1395_vm1, %v1349_v58  ;;  %v1374_v3 = vpop.f32.mrf.mxu1 }
 0x1a2   :  { %v1086_v62 = vpop.f32.mrf.mxu0 }
 0x1a3   :  { %v1352_v63 = vadd.f32 %v1351_v39, %v1086_v62  ;;  %v1375_v6 = vpop.f32.mrf.mxu1 }
 0x1a4   :  { %v1088_v2 = vpop.f32.mrf.mxu0 }
 0x1a5   :  { %1435 = vst.msk [vmem:[%s2627_s3 + $0x138] sm:$0xff] %vm1395_vm1, %v1352_v63  ;;  %v1377_v8 = vpop.f32.mrf.mxu1 }
 0x1a6   :  { %v1091_v4 = vpop.f32.mrf.mxu0 }
 0x1a7   :  { %v1357_v5 = vadd.f32 %v1356_v44, %v1091_v4  ;;  %v1380_v11 = vpop.f32.mrf.mxu1 }
 0x1a8   :  { %v1093_v7 = vpop.f32.mrf.mxu0 }
 0x1a9   :  { %1436 = vst.msk [vmem:[%s2627_s3 + $0x140] sm:$0xff] %vm1395_vm1, %v1357_v5  ;;  %v1382_v13 = vpop.f32.mrf.mxu1 }
 0x1aa   :  { %v1094_v9 = vpop.f32.mrf.mxu0 }
 0x1ab   :  { %v1360_v10 = vadd.f32 %v1359_v49, %v1094_v9  ;;  %v1383_v16 = vpop.f32.mrf.mxu1 }
 0x1ac   :  { %v1096_v12 = vpop.f32.mrf.mxu0 }
 0x1ad   :  { %1437 = vst.msk [vmem:[%s2627_s3 + $0x148] sm:$0xff] %vm1395_vm1, %v1360_v10  ;;  %v1385_v18 = vpop.f32.mrf.mxu1 }
 0x1ae   :  { %v1099_v14 = vpop.f32.mrf.mxu0 }
 0x1af   :  { %v1365_v15 = vadd.f32 %v1364_v54, %v1099_v14  ;;  %v1388_v21 = vpop.f32.mrf.mxu1 }
 0x1b0   :  { %v1101_v17 = vpop.f32.mrf.mxu0 }
 0x1b1   :  { %1438 = vst.msk [vmem:[%s2627_s3 + $0x150] sm:$0xff] %vm1395_vm1, %v1365_v15  ;;  %v1390_v23 = vpop.f32.mrf.mxu1 }
 0x1b2   :  { %v1102_v19 = vpop.f32.mrf.mxu0 }
 0x1b3   :  { %v1368_v20 = vadd.f32 %v1367_v59, %v1102_v19  ;;  %v1391_v25 = vpop.f32.mrf.mxu1 }
 0x1b4   :  { %v1104_v22 = vpop.f32.mrf.mxu0 }
 0x1b5   :  { %1439 = vst.msk [vmem:[%s2627_s3 + $0x158] sm:$0xff] %vm1395_vm1, %v1368_v20  ;;  %v1393_v27 = vpop.f32.mrf.mxu1 }
 0x1b6   :  { %v1107_v24 = vpop.f32.mrf.mxu0 }
 0x1b7   :  { %v1373_v0 = vadd.f32 %v1372_v1, %v1107_v24 }
 0x1b8   :  { %v1109_v26 = vpop.f32.mrf.mxu0 }
 0x1b9   :  { %1440 = vst.msk [vmem:[%s2627_s3 + $0x160] sm:$0xff] %vm1395_vm1, %v1373_v0 }
 0x1ba   :  { %v1110_v28 = vpop.f32.mrf.mxu0 }
 0x1bb   :  { %v1376_v29 = vadd.f32 %v1375_v6, %v1110_v28 }
 0x1bc   :  { %v1112_v30 = vpop.f32.mrf.mxu0 }
 0x1bd   :  { %1441 = vst.msk [vmem:[%s2627_s3 + $0x168] sm:$0xff] %vm1395_vm1, %v1376_v29 }
 0x1be   :  { %v1115_v31 = vpop.f32.mrf.mxu0 }
 0x1bf   :  { %v1381_v32 = vadd.f32 %v1380_v11, %v1115_v31 }
 0x1c0   :  { %v1117_v33 = vpop.f32.mrf.mxu0 }
 0x1c1   :  { %1442 = vst.msk [vmem:[%s2627_s3 + $0x170] sm:$0xff] %vm1395_vm1, %v1381_v32 }
 0x1c2   :  { %v1118_v34 = vpop.f32.mrf.mxu0 }
 0x1c3   :  { %v1384_v35 = vadd.f32 %v1383_v16, %v1118_v34 }
 0x1c4   :  { %v1120_v36 = vpop.f32.mrf.mxu0 }
 0x1c5   :  { %1443 = vst.msk [vmem:[%s2627_s3 + $0x178] sm:$0xff] %vm1395_vm1, %v1384_v35 }
 0x1c6   :  { %v1123_v37 = vpop.f32.mrf.mxu0 }
 0x1c7   :  { %v1389_v38 = vadd.f32 %v1388_v21, %v1123_v37 }
 0x1c8   :  { %v1125_v39 = vpop.f32.mrf.mxu0 }
 0x1c9   :  { %1444 = vst.msk [vmem:[%s2627_s3 + $0x180] sm:$0xff] %vm1395_vm1, %v1389_v38 }
 0x1ca   :  { %v1126_v40 = vpop.f32.mrf.mxu0 }
 0x1cb   :  { %v1392_v41 = vadd.f32 %v1391_v25, %v1126_v40 }
 0x1cc   :  { %v1128_v42 = vpop.f32.mrf.mxu0 }
 0x1cd   :  { %1445 = vst.msk [vmem:[%s2627_s3 + $0x188] sm:$0xff] %vm1395_vm1, %v1392_v41 }

</bundles_post_ra>
